<compile_context>
chip_gen: v5e
topology: v5e:2x2
jax: 0.10.0
libtpu: 0.0.40
codegen_flags: <defaults>
</compile_context>

<pallas_src>
import jax
import jax.numpy as jnp
from jax.experimental import pallas as pl
from jax.experimental.pallas import tpu as pltpu

_LANE = 128
_SUBLANE = 8
_TM_CANDIDATES = (8192, 4096, 2048, 1024, 512, 256, 128, 64, 32, 16, 8)


def _round_up(x, m):
    return ((x + m - 1) // m) * m


def _cdiv(a, b):
    return (a + b - 1) // b


def _vmem_capacity_bytes():
    """Physical VMEM per TensorCore for the current generation (with fallback)."""
    try:
        info = pltpu.get_tpu_info()
        cap = getattr(info, "vmem_capacity_bytes", None)
        if cap:
            return int(cap)
    except Exception:
        pass
    return 64 * 1024 * 1024  # conservative default (v7x per-core VMEM)


def _choose_tiles(m, k, n_pad, n_out, x_isz, w_isz, b_isz, o_isz, budget):
    """Pick (tm, tk) whose pipelined VMEM footprint fits `budget`.

    Prefers a fully VMEM-resident weight (tk == K, single-buffered) as long as
    that still leaves room for a reasonably sized M tile; otherwise falls back
    to streaming the weight along K (with an f32 accumulator in the kernel).
    """
    m8 = _round_up(max(m, 1), _SUBLANE)

    # K-tile candidates: full K (always layout-legal), plus divisors of K that
    # are multiples of 128 (keeps X's lane dim / W's sublane dim aligned and
    # avoids partial reduction blocks reading undefined data).
    tk_cands = [k]
    for cand in (16384, 8192, 4096, 2048, 1024, 512, 256, 128):
        if cand < k and k % cand == 0:
            tk_cands.append(cand)

    def footprint(tm, tk):
        n_wbuf = 1 if tk == k else 2          # constant index map -> 1 buffer
        wbytes = n_wbuf * tk * n_pad * w_isz  # weight
        bbytes = n_out * b_isz                # bias (single buffer)
        xbytes = 2 * tm * tk * x_isz          # double-buffered X stream
        obytes = 2 * tm * n_out * o_isz       # output blocks
        abytes = tm * n_pad * 4               # f32 accumulator scratch
        return wbytes + bbytes + xbytes + obytes + abytes

    def best_tm(tk):
        for cand in _TM_CANDIDATES:
            tm = min(cand, m8)
            if footprint(tm, tk) <= budget:
                return tm
        return None

    pref_tm = min(256, m8)  # don't keep W resident if it forces a tiny M tile
    for tk in tk_cands:
        tm = best_tm(tk)
        if tm is not None and tm >= pref_tm:
            return tm, tk
    for tk in tk_cands:
        tm = best_tm(tk)
        if tm is not None:
            return tm, tk
    # Nothing fits the budget: fall back to the smallest tiles and rely on the
    # explicitly raised vmem_limit_bytes (better than silently overflowing).
    return min(_SUBLANE, m8), tk_cands[-1]


def _flatten_head_kernel(x_ref, w_ref, b_ref, o_ref, acc_ref):
    k = pl.program_id(1)

    @pl.when(k == 0)
    def _init():
        acc_ref[...] = jnp.zeros_like(acc_ref)

    # (TM, TK) @ (TK, N_pad) on the MXU with f32 accumulation.
    acc_ref[...] += jnp.dot(x_ref[...], w_ref[...],
                            preferred_element_type=jnp.float32)

    @pl.when(k == pl.num_programs(1) - 1)
    def _finalize():
        n_out = o_ref.shape[-1]
        acc = acc_ref[...][:, :n_out]               # drop the lane padding
        o_ref[...] = (acc + b_ref[...].astype(jnp.float32)).astype(o_ref.dtype)
    # TODO(synk): training-mode dropout (head_dropout) is omitted; nn.Dropout
    # is the identity at inference, which is what is reproduced here.


def prepare_flatten_head_params(weight, bias, param_dtype=None):
    """One-time ("model load") parameter prep.

    weight: (label_len, K) in PyTorch nn.Linear layout; bias: (label_len,).
    Returns (w_kn_padded, bias_2d, label_len): weight transposed to (K, N_pad)
    with the N axis zero-padded to a 128-lane multiple, bias reshaped to
    (1, label_len).  Pass param_dtype=jnp.bfloat16 when activations run in bf16
    to halve the resident weight footprint / HBM traffic (MXU still accumulates
    in f32).
    """
    n, k = weight.shape
    n_pad = _round_up(n, _LANE)
    w_dtype = param_dtype if param_dtype is not None else weight.dtype
    b_dtype = param_dtype if param_dtype is not None else bias.dtype
    w_kn = jnp.zeros((k, n_pad), dtype=w_dtype).at[:, :n].set(
        weight.T.astype(w_dtype))
    b2d = bias.reshape(1, n).astype(b_dtype)
    return w_kn, b2d, n


def patchtst_flatten_head(hidden_states, w_kn_padded, bias_2d, label_len):
    """hidden_states: (B, C, P, D); params from prepare_flatten_head_params."""
    B, C, P, D = hidden_states.shape
    M = B * C
    K = P * D
    n_pad = w_kn_padded.shape[1]
    assert w_kn_padded.shape[0] == K
    assert bias_2d.shape == (1, label_len)
    assert label_len <= n_pad

    x2d = hidden_states.reshape(M, K)  # row-major flatten, matches torch

    x_isz = jnp.dtype(hidden_states.dtype).itemsize
    w_isz = jnp.dtype(w_kn_padded.dtype).itemsize
    b_isz = jnp.dtype(bias_2d.dtype).itemsize
    o_isz = x_isz  # output dtype follows the activations

    # Per-generation VMEM budget; raise the scoped limit explicitly so v5e's
    # ~16 MiB default never gates the tile choice.
    cap = _vmem_capacity_bytes()
    budget = int(cap * 0.65)
    vmem_limit = int(cap * 0.85)

    tm, tk = _choose_tiles(M, K, n_pad, label_len,
                           x_isz, w_isz, b_isz, o_isz, budget)

    # Guarantee >= 2 (up to 8) M grid steps when M allows: keeps both v7x
    # TensorCores busy and overlaps the X DMA with compute.
    if M > _SUBLANE:
        target_steps = min(8, max(2, M // 512))
        cap_tm = _round_up(_cdiv(M, target_steps), _SUBLANE)
        tm = max(_SUBLANE, min(tm, cap_tm))

    m_steps = _cdiv(M, tm)
    k_steps = _cdiv(K, tk)

    if k_steps == 1:
        # Resident weight: constant index map -> a single buffer is enough.
        w_spec = pl.BlockSpec((tk, n_pad), lambda i, k: (0, 0),
                              pipeline_mode=pl.Buffered(1))
    else:
        # Streamed weight: re-fetched once per M tile (overhead ~ n_pad/tm of
        # the X traffic, kept small by preferring tm >= 256 in _choose_tiles).
        w_spec = pl.BlockSpec((tk, n_pad), lambda i, k: (k, 0))

    cost = pl.CostEstimate(
        flops=2 * M * K * n_pad,
        transcendentals=0,
        bytes_accessed=(M * K * x_isz + K * n_pad * w_isz
                        + label_len * b_isz + M * label_len * o_isz),
    )

    out2d = pl.pallas_call(
        _flatten_head_kernel,
        out_shape=jax.ShapeDtypeStruct((M, label_len), hidden_states.dtype),
        grid_spec=pltpu.PrefetchScalarGridSpec(
            num_scalar_prefetch=0,
            grid=(m_steps, k_steps),
            in_specs=[
                # X: streamed over M (and K); the binding HBM resource.
                # (If measurement shows exposed DMA latency, sweep
                #  pipeline_mode=pl.Buffered(3) here.)
                pl.BlockSpec((tm, tk), lambda i, k: (i, k)),
                w_spec,
                # Bias: tiny, constant index map, single buffer.
                pl.BlockSpec((1, label_len), lambda i, k: (0, 0),
                             pipeline_mode=pl.Buffered(1)),
            ],
            out_specs=pl.BlockSpec((tm, label_len), lambda i, k: (i, 0)),
            scratch_shapes=[pltpu.VMEM((tm, n_pad), jnp.float32)],
        ),
        compiler_params=pltpu.CompilerParams(
            dimension_semantics=("parallel", "arbitrary"),
            vmem_limit_bytes=vmem_limit),
        cost_estimate=cost,
    )(x2d, w_kn_padded, bias_2d)

    return out2d.reshape(B, C, label_len)


if __name__ == "__main__":
    # Small config consistent with PatchTST: batch=2, channels=4,
    # num_patches=8, d_model=32, label_len=16.
    batch, channels, num_patches, d_model, label_len = 2, 4, 8, 32, 16

    key = jax.random.PRNGKey(0)
    k_x, k_w, k_b = jax.random.split(key, 3)

    hidden_states = jax.random.normal(
        k_x, (batch, channels, num_patches, d_model), dtype=jnp.float32)
    # nn.Linear parameter shapes: weight (out, in), bias (out,).
    weight = jax.random.normal(
        k_w, (label_len, num_patches * d_model), dtype=jnp.float32) * 0.02
    bias = jax.random.normal(k_b, (label_len,), dtype=jnp.float32) * 0.02

    # One-time parameter prep (transpose + lane padding), outside the hot path.
    w_kn_padded, bias_2d, n_valid = prepare_flatten_head_params(weight, bias)

    out = patchtst_flatten_head(hidden_states, w_kn_padded, bias_2d, n_valid)
    out = jax.block_until_ready(out)

    # Reference check in plain JAX (same semantics as the PyTorch module, eval).
    ref = hidden_states.reshape(batch, channels, -1) @ weight.T + bias
    assert out.shape == (batch, channels, label_len)
    assert jnp.allclose(out, ref, atol=1e-4, rtol=1e-4)

    print("KERNEL_OK")
</pallas_src>

<mosaic_0001>
module attributes {stable_mosaic.version = 11 : i64} {
  func.func @_flatten_head_kernel(%arg0: i32, %arg1: i32, %arg2: memref<8x256xf32, #tpu.memory_space<vmem>>, %arg3: memref<256x128xf32, #tpu.memory_space<vmem>>, %arg4: memref<1x16xf32, #tpu.memory_space<vmem>>, %arg5: memref<8x16xf32, #tpu.memory_space<vmem>>, %arg6: memref<8x128xf32, #tpu.memory_space<vmem>>) attributes {dimension_semantics = [#tpu.dimension_semantics<parallel>, #tpu.dimension_semantics<arbitrary>], iteration_bounds = array<i64: 1, 1>, scalar_prefetch = 0 : i64, scratch_operands = 1 : i64, tpu.core_type = #tpu.core_type<tc>, window_params = [{transform_indices = @transform_0, window_bounds = array<i64: 8, 256>}, {pipeline_mode = #tpu.pipeline_mode<synchronous>, transform_indices = @transform_1, window_bounds = array<i64: 256, 128>}, {pipeline_mode = #tpu.pipeline_mode<synchronous>, transform_indices = @transform_2, window_bounds = array<i64: 1, 16>}, {transform_indices = @transform_3, window_bounds = array<i64: 8, 16>}]} {
    %c0_i32 = arith.constant 0 : i32
    %0 = arith.cmpi eq, %arg1, %c0_i32 : i32
    %1 = arith.extui %0 : i1 to i32
    %c0_i32_0 = arith.constant 0 : i32
    %2 = arith.cmpi ne, %1, %c0_i32_0 : i32
    scf.if %2 {
      %cst_10 = arith.constant 0.000000e+00 : f32
      %12 = vector.broadcast %cst_10 : f32 to vector<8x128xf32>
      %c0_11 = arith.constant 0 : index
      %c0_12 = arith.constant 0 : index
      %13 = vector.load %arg6[%c0_11, %c0_12] : memref<8x128xf32, #tpu.memory_space<vmem>>, vector<8x128xf32>
      tpu.vector_store %arg6[%c0_11, %c0_12], %12 {strides = array<i32>} : memref<8x128xf32, #tpu.memory_space<vmem>>, vector<8x128xf32>,
    } else {
    }
    %c0 = arith.constant 0 : index
    %c0_1 = arith.constant 0 : index
    %3 = vector.load %arg6[%c0, %c0_1] : memref<8x128xf32, #tpu.memory_space<vmem>>, vector<8x128xf32>
    %c0_2 = arith.constant 0 : index
    %c0_3 = arith.constant 0 : index
    %4 = vector.load %arg2[%c0_2, %c0_3] : memref<8x256xf32, #tpu.memory_space<vmem>>, vector<8x256xf32>
    %c0_4 = arith.constant 0 : index
    %c0_5 = arith.constant 0 : index
    %5 = vector.load %arg3[%c0_4, %c0_5] : memref<256x128xf32, #tpu.memory_space<vmem>>, vector<256x128xf32>
    %cst = arith.constant dense<0.000000e+00> : vector<8x128xf32>
    %6 = tpu.matmul %4, %5, %cst {dimension_numbers = #tpu.dot_dimension_numbers<[1], [0], [0], [1], [0, 0, 1, 1], [], []>} : vector<8x256xf32>, vector<256x128xf32>, vector<8x128xf32> -> vector<8x128xf32>
    %7 = arith.addf %3, %6 : vector<8x128xf32>
    %c0_6 = arith.constant 0 : index
    %c0_7 = arith.constant 0 : index
    %8 = vector.load %arg6[%c0_6, %c0_7] : memref<8x128xf32, #tpu.memory_space<vmem>>, vector<8x128xf32>
    tpu.vector_store %arg6[%c0_6, %c0_7], %7 {strides = array<i32>} : memref<8x128xf32, #tpu.memory_space<vmem>>, vector<8x128xf32>,
    %c0_i32_8 = arith.constant 0 : i32
    %9 = arith.cmpi eq, %arg1, %c0_i32_8 : i32
    %10 = arith.extui %9 : i1 to i32
    %c0_i32_9 = arith.constant 0 : i32
    %11 = arith.cmpi ne, %10, %c0_i32_9 : i32
    scf.if %11 {
      %c0_10 = arith.constant 0 : index
      %c0_11 = arith.constant 0 : index
      %12 = vector.load %arg6[%c0_10, %c0_11] : memref<8x128xf32, #tpu.memory_space<vmem>>, vector<8x128xf32>
      %13 = vector.extract_strided_slice %12 {offsets = [0, 0], sizes = [8, 16], strides = [1, 1]} : vector<8x128xf32> to vector<8x16xf32>
      %c0_12 = arith.constant 0 : index
      %c0_13 = arith.constant 0 : index
      %14 = vector.load %arg4[%c0_12, %c0_13] : memref<1x16xf32, #tpu.memory_space<vmem>>, vector<1x16xf32>
      %15 = vector.broadcast %14 : vector<1x16xf32> to vector<8x16xf32>
      %16 = arith.addf %13, %15 : vector<8x16xf32>
      %c0_14 = arith.constant 0 : index
      %c0_15 = arith.constant 0 : index
      %17 = vector.load %arg5[%c0_14, %c0_15] : memref<8x16xf32, #tpu.memory_space<vmem>>, vector<8x16xf32>
      tpu.vector_store %arg5[%c0_14, %c0_15], %16 {strides = array<i32>} : memref<8x16xf32, #tpu.memory_space<vmem>>, vector<8x16xf32>,
    } else {
    }
    return
  }
  func.func @transform_0(%arg0: i32, %arg1: i32) -> (i32, i32) {
    %c0_i32 = arith.constant 0 : i32
    return %arg0, %arg1 : i32, i32
  }
  func.func @transform_1(%arg0: i32, %arg1: i32) -> (i32, i32) {
    %c0_i32 = arith.constant 0 : i32
    %c0_i32_0 = arith.constant 0 : i32
    %c0_i32_1 = arith.constant 0 : i32
    return %c0_i32, %c0_i32_0 : i32, i32
  }
  func.func @transform_2(%arg0: i32, %arg1: i32) -> (i32, i32) {
    %c0_i32 = arith.constant 0 : i32
    %c0_i32_0 = arith.constant 0 : i32
    %c0_i32_1 = arith.constant 0 : i32
    return %c0_i32, %c0_i32_0 : i32, i32
  }
  func.func @transform_3(%arg0: i32, %arg1: i32) -> (i32, i32) {
    %c0_i32 = arith.constant 0 : i32
    %c0_i32_0 = arith.constant 0 : i32
    return %arg0, %c0_i32 : i32, i32
  }
}

</mosaic_0001>

<bundles_post_ra>
// kernel: tpu_custom_call.1
= control target key start
LH: loop header
LB: loop body
LE: loop exit
PB: predicated region body
PF: predicated region fallthrough
CT: control target
= control target key end

     0   :  { %8 = vsyncpa [#allocation4], 0  ;;  %s277_s0 = inlined_call_operand.hbm [shape: f32[8,256], index: 0, kind: input, shape index: {}]   ;;  %s278_s1 = inlined_call_operand.hbm [shape: f32[256,128], index: 1, kind: input, shape index: {}]   ;;  %s279_s2 = inlined_call_operand.vmem [shape: f32[1,16], index: 2, kind: input, shape index: {}]   ;;  %s280_s3 = inlined_call_operand.hbm [shape: f32[8,16], index: 3, kind: output, shape index: {}]  }
   0x1   :  { %9 = vsyncpa [#allocation7], 0 }
   0x2   :  { %10 = vsyncpa [#allocation5], 0  ;;  %s16_s14 = sshll.u32 %s277_s0, 4  ;;  %s240_s15 = smov [#allocation3]   ;;  %s17_s14 = int_to_ptr.hbm [resolvable:$true] %s16_s14 }
   0x3   :  { %s18_s16 = sshll.u32 %s240_s15, 4  ;;  %s26_s19 = sshll.u32 %s278_s1, 4  ;;  %s19_s16 = int_to_ptr.vmem [resolvable:$true] %s18_s16  ;;  %s27_s19 = int_to_ptr.hbm [resolvable:$true] %s26_s19 }
   0x4   :  { %21 = dma.hbm_to_vmem [thread:$0]  %s17_s14, 256, %s19_s16, [#allocation4]  }
   0x5   :  { %s241_s20 = smov [#allocation6]   ;;  %s242_s22 = smov 128  }
   0x6   :  { %s28_s21 = sshll.u32 %s241_s20, 4  ;;  %s243_s23 = smov 8   ;;  %s29_s21 = int_to_ptr.vmem [resolvable:$true] %s28_s21 }
   0x7   :  { %34 = dma.hbm_to_vmem [thread:$0]  %s27_s19, 4096, %s29_s21, [#allocation7], %s242_s22, %s242_s22, %s243_s23  }
   0x8   :  { %234 = dma.done.wait [#allocation4], 256  }
   0x9   :  { %235 = vsyncadd [#allocation4], 4294967040 }
   0xa   :  { %236 = dma.done.wait [#allocation7], 4096  }
   0xb   :  { %237 = vsyncadd [#allocation7], 4294963200  ;;  %v68_v0 = vld [vmem:[#allocation6 + $0x78] sm:$0xff]  ;;  %v67_v2 = vld [vmem:[#allocation6 + $0x70] sm:$0xff]  ;;  %s244_s24 = smov [#allocation8]   ;;  %s145_s28 = sshll.u32 %s280_s3, 4  ;;  %s146_s28 = int_to_ptr.hbm [resolvable:$true] %s145_s28 }
   0xc   :  { %v84_v1 = vld [vmem:[#allocation6 + $0xf8] sm:$0xff]  ;;  %85 = vmatpush.msra.mxu0 %v68_v0  ;;  %v83_v3 = vld [vmem:[#allocation6 + $0xf0] sm:$0xff]  ;;  %v66_v4 = vld [vmem:[#allocation6 + $0x68] sm:$0xff]  ;;  %s143_s25 = sshll.u32 %s244_s24, 4  ;;  %vm136_vm0 = vcmask 130048   ;;  %s144_s25 = int_to_ptr.vmem [resolvable:$true] %s143_s25 }
   0xd   :  { %105 = vmatpush.msra.mxu1 %v84_v1  ;;  %v82_v5 = vld [vmem:[#allocation6 + $0xe8] sm:$0xff]  ;;  %v65_v6 = vld [vmem:[#allocation6 + $0x60] sm:$0xff]  ;;  %v64_v8 = vld [vmem:[#allocation6 + $0x58] sm:$0xff] }
   0xe   :  { %86 = vmatpush.msra.mxu0 %v67_v2  ;;  %v81_v7 = vld [vmem:[#allocation6 + $0xe0] sm:$0xff]  ;;  %v80_v9 = vld [vmem:[#allocation6 + $0xd8] sm:$0xff]  ;;  %v63_v10 = vld [vmem:[#allocation6 + $0x50] sm:$0xff] }
   0xf   :  { %106 = vmatpush.msra.mxu1 %v83_v3  ;;  %v79_v11 = vld [vmem:[#allocation6 + $0xd0] sm:$0xff]  ;;  %v62_v12 = vld [vmem:[#allocation6 + $0x48] sm:$0xff]  ;;  %v61_v14 = vld [vmem:[#allocation6 + $0x40] sm:$0xff] }
  0x10   :  { %87 = vmatpush.msra.mxu0 %v66_v4  ;;  %v78_v13 = vld [vmem:[#allocation6 + $0xc8] sm:$0xff]  ;;  %v77_v15 = vld [vmem:[#allocation6 + $0xc0] sm:$0xff]  ;;  %v60_v16 = vld [vmem:[#allocation6 + $0x38] sm:$0xff] }
  0x11   :  { %107 = vmatpush.msra.mxu1 %v82_v5  ;;  %v76_v17 = vld [vmem:[#allocation6 + $0xb8] sm:$0xff]  ;;  %v59_v18 = vld [vmem:[#allocation6 + $0x30] sm:$0xff]  ;;  %v58_v20 = vld [vmem:[#allocation6 + $0x28] sm:$0xff] }
  0x12   :  { %88 = vmatpush.msra.mxu0 %v65_v6  ;;  %v75_v19 = vld [vmem:[#allocation6 + $0xb0] sm:$0xff]  ;;  %v74_v21 = vld [vmem:[#allocation6 + $0xa8] sm:$0xff]  ;;  %v57_v22 = vld [vmem:[#allocation6 + $0x20] sm:$0xff] }
  0x13   :  { %108 = vmatpush.msra.mxu1 %v81_v7  ;;  %v73_v23 = vld [vmem:[#allocation6 + $0xa0] sm:$0xff]  ;;  %v56_v24 = vld [vmem:[#allocation6 + $0x18] sm:$0xff]  ;;  %v55_v26 = vld [vmem:[#allocation6 + $0x10] sm:$0xff] }
  0x14   :  { %89 = vmatpush.msra.mxu0 %v64_v8  ;;  %v72_v25 = vld [vmem:[#allocation6 + $0x98] sm:$0xff]  ;;  %v71_v27 = vld [vmem:[#allocation6 + $0x90] sm:$0xff]  ;;  %v54_v28 = vld [vmem:[#allocation6 + $0x8] sm:$0xff] }
  0x15   :  { %109 = vmatpush.msra.mxu1 %v80_v9  ;;  %v70_v29 = vld [vmem:[#allocation6 + $0x88] sm:$0xff]  ;;  %v53_v30 = vld [vmem:[#allocation6] sm:$0xff]  ;;  %v51_v32 = vld [vmem:[#allocation3] sm:$0xff] }
  0x16   :  { %90 = vmatpush.msra.mxu0 %v63_v10  ;;  %v69_v31 = vld [vmem:[#allocation6 + $0x80] sm:$0xff]  ;;  %v52_v33 = vld [vmem:[#allocation3 + $0x8] sm:$0xff]  ;;  %v161_v34 = vld [vmem:[%s279_s2] ss:$0 sm:$0xff] }
  0x17   :  { %110 = vmatpush.msra.mxu1 %v79_v11 }
  0x18   :  { %91 = vmatpush.msra.mxu0 %v62_v12 }
  0x19   :  { %111 = vmatpush.msra.mxu1 %v78_v13 }
  0x1a   :  { %92 = vmatpush.msra.mxu0 %v61_v14 }
  0x1b   :  { %112 = vmatpush.msra.mxu1 %v77_v15 }
  0x1c   :  { %93 = vmatpush.msra.mxu0 %v60_v16 }
  0x1d   :  { %113 = vmatpush.msra.mxu1 %v76_v17 }
  0x1e   :  { %94 = vmatpush.msra.mxu0 %v59_v18 }
  0x1f   :  { %114 = vmatpush.msra.mxu1 %v75_v19 }
  0x20   :  { %95 = vmatpush.msra.mxu0 %v58_v20 }
  0x21   :  { %115 = vmatpush.msra.mxu1 %v74_v21 }
  0x22   :  { %96 = vmatpush.msra.mxu0 %v57_v22 }
  0x23   :  { %116 = vmatpush.msra.mxu1 %v73_v23 }
  0x24   :  { %97 = vmatpush.msra.mxu0 %v56_v24 }
  0x25   :  { %117 = vmatpush.msra.mxu1 %v72_v25 }
  0x26   :  { %98 = vmatpush.msra.mxu0 %v55_v26 }
  0x27   :  { %118 = vmatpush.msra.mxu1 %v71_v27 }
  0x28   :  { %99 = vmatpush.msra.mxu0 %v54_v28 }
  0x29   :  { %119 = vmatpush.msra.mxu1 %v70_v29 }
  0x2a   :  { %100 = vmatpush.msra.mxu0 %v53_v30 }
  0x2b   :  { %120 = vmatpush.msra.mxu1 %v69_v31  ;;  %101 = vmatmul.f32.vlgmr.msra.gmra.mxu0 %v51_v32 }
  0x2c   :  { %121 = vmatmul.f32.vlgmr.msra.gmra.mxu1 %v52_v33 }
  0xa8   :  { %v102_v35 = vpop.f32.mrf.mxu0 }
  0xa9   :  { %v122_v36 = vpop.f32.mrf.mxu1 }
  0xaa   :  { %v123_v37 = vadd.f32 %v122_v36, %v102_v35 }
  0xac   :  { %v135_v38 = vadd.f32 %v161_v34, %v123_v37 }
  0xae   :  { %137 = vst.msk [vmem:[#allocation8] sm:$0xff] %vm136_vm0, %v135_v38 }
  0xaf   :  { %148 = dma.vmem_to_hbm [thread:$0]  %s144_s25, 128, %s146_s28, [#allocation5]  }
  0xb0   :  { %238 = dma.done.wait [#allocation5], 128  }
  0xb1   :  { %239 = vsyncadd [#allocation5], 4294967168 }
  0xb2   :  { %153 = vsyncpa [#allocation4], 1 }
  0xb3   :  { %154 = vsyncpa [#allocation7], 1 }
  0xb4   :  { %155 = vsyncpa [#allocation5], 1 }

</bundles_post_ra>
